<compile_context>
chip_gen: v6e
topology: v6e:2x2x1
jax: 0.10.0
libtpu: 0.0.40
codegen_flags: <defaults>
</compile_context>

<pallas_src>
import functools

import jax
import jax.numpy as jnp
from jax.experimental import pallas as pl
from jax.experimental.pallas import tpu as pltpu

F_PAD = 128  # lane-dense padded feature width


def _gcn_fused_kernel(adj_ref, x_ref, w_ref, b_ref, o_ref):
    # adj_ref : (Np, Np)          bf16 dense adjacency (adj_t), zero-padded
    # x_ref   : (Np, F_PAD)       f32 input features, zero-padded to 128 lanes
    # w_ref   : (1, F_PAD, F_PAD) bf16 weight of layer `l` (already W^T, padded)
    # b_ref   : (1, 1, F_PAD)     f32 bias of layer `l` (padded)
    # o_ref   : (Np, F_PAD)       f32 resident activation / final output
    layer = pl.program_id(0)
    last = pl.num_programs(0) - 1

    # Seed the resident activation with the input features on the first layer.
    @pl.when(layer == 0)
    def _():
        o_ref[...] = x_ref[...]

    h = o_ref[...]                                        # (Np, F_PAD) f32
    xw = jnp.dot(h.astype(jnp.bfloat16), w_ref[0],
                 preferred_element_type=jnp.float32)      # feature transform
    agg = jnp.dot(adj_ref[...], xw.astype(jnp.bfloat16),
                  preferred_element_type=jnp.float32)     # neighborhood agg
    out = agg + b_ref[0]                                  # bias/ReLU in f32 (VPU)

    @pl.when(layer != last)
    def _():
        o_ref[...] = jnp.maximum(out, 0.0)                # hidden: ReLU
        # TODO(synk): training-mode dropout omitted (inference => identity).

    @pl.when(layer == last)
    def _():
        o_ref[...] = out                                  # last layer: linear


@jax.jit
def gcn_forward(x, adj_t, params):
    """Fused multi-layer GCN forward: one pallas_call over grid=(num_layers,)."""
    n = adj_t.shape[0]
    n_pad = ((n + 7) // 8) * 8  # sublane-align node dimension
    num_layers = len(params)
    f_out = params[-1][0].shape[1]
    assert x.shape[1] <= F_PAD and all(w.shape[1] <= F_PAD for w, _ in params)

    # Zero-pad features / adjacency / weights / biases to dense tile shapes.
    x_p = jnp.zeros((n_pad, F_PAD), jnp.float32).at[:n, : x.shape[1]].set(x)
    adj_p = jnp.zeros((n_pad, n_pad), jnp.bfloat16).at[:n, :n].set(
        adj_t.astype(jnp.bfloat16))  # 0/1 entries: exact in bf16
    w_stack = jnp.zeros((num_layers, F_PAD, F_PAD), jnp.bfloat16)
    b_stack = jnp.zeros((num_layers, 1, F_PAD), jnp.float32)
    for i, (w, b) in enumerate(params):
        w_stack = w_stack.at[i, : w.shape[0], : w.shape[1]].set(
            w.astype(jnp.bfloat16))
        b_stack = b_stack.at[i, 0, : b.shape[0]].set(b)

    cost = pl.CostEstimate(
        flops=2 * num_layers * (n_pad * F_PAD * F_PAD + n_pad * n_pad * F_PAD),
        transcendentals=0,
        bytes_accessed=(adj_p.size * 2 + x_p.size * 4 + w_stack.size * 2
                        + b_stack.size * 4 + n_pad * F_PAD * 4),
    )

    out_padded = pl.pallas_call(
        _gcn_fused_kernel,
        out_shape=jax.ShapeDtypeStruct((n_pad, F_PAD), jnp.float32),
        grid_spec=pltpu.PrefetchScalarGridSpec(
            num_scalar_prefetch=0,
            grid=(num_layers,),
            in_specs=[
                pl.BlockSpec((n_pad, n_pad), lambda l: (0, 0)),        # adjacency
                pl.BlockSpec((n_pad, F_PAD), lambda l: (0, 0)),        # features
                pl.BlockSpec((1, F_PAD, F_PAD), lambda l: (l, 0, 0)),  # layer W
                pl.BlockSpec((1, 1, F_PAD), lambda l: (l, 0, 0)),      # layer b
            ],
            out_specs=pl.BlockSpec((n_pad, F_PAD), lambda l: (0, 0)),
        ),
        compiler_params=pltpu.CompilerParams(
            # Layers are sequential (the resident output block carries the
            # activation across grid steps), so this axis must be "arbitrary".
            dimension_semantics=("arbitrary",),
        ),
        cost_estimate=cost,
    )(adj_p, x_p, w_stack, b_stack)

    return out_padded[:n, :f_out]


def init_gcn_params(key, in_channels, hidden_channels, out_channels, num_layers):
    """Deterministic glorot-uniform weights / zero biases, PyG GCNConv shapes."""
    dims = [in_channels] + [hidden_channels] * (num_layers - 1) + [out_channels]
    params = []
    for li in range(num_layers):
        f_in, f_out = dims[li], dims[li + 1]
        key, sub = jax.random.split(key)
        limit = jnp.sqrt(6.0 / (f_in + f_out))
        # stored already transposed: shape (f_in, f_out) so x @ w == x @ W^T
        w = jax.random.uniform(sub, (f_in, f_out), jnp.float32, -limit, limit)
        b = jnp.zeros((f_out,), jnp.float32)
        params.append((w, b))
    return params


if __name__ == "__main__":
    key = jax.random.PRNGKey(0)
    N = 128            # number of nodes
    in_channels = 16
    hidden_channels = 32
    out_channels = 8
    num_layers = 3
    dropout = 0.5      # identity in inference mode

    k_x, k_adj, k_p = jax.random.split(key, 3)
    x = jax.random.normal(k_x, (N, in_channels), jnp.float32)
    # Dense adjacency (adj_t): sparse-ish 0/1 matrix as float32.
    adj_t = (jax.random.uniform(k_adj, (N, N)) < 0.05).astype(jnp.float32)

    params = init_gcn_params(k_p, in_channels, hidden_channels, out_channels,
                             num_layers)

    out = gcn_forward(x, adj_t, params)
    out = jax.block_until_ready(out)
    assert out.shape == (N, out_channels)

    # Reference 1: same math as the kernel (bf16 matmul inputs, f32 accumulate).
    h = x
    for i, (w, b) in enumerate(params):
        xw = jnp.dot(h.astype(jnp.bfloat16), w.astype(jnp.bfloat16),
                     preferred_element_type=jnp.float32)
        h = jnp.dot(adj_t.astype(jnp.bfloat16), xw.astype(jnp.bfloat16),
                    preferred_element_type=jnp.float32) + b
        if i < num_layers - 1:
            h = jnp.maximum(h, 0.0)
    assert jnp.allclose(out, h, atol=1e-2, rtol=1e-2), \
        float(jnp.max(jnp.abs(out - h)))

    # Reference 2: full-f32 math; bf16 matmul inputs cost well under 5% error.
    h32 = x
    for i, (w, b) in enumerate(params):
        h32 = adj_t @ (h32 @ w) + b
        if i < num_layers - 1:
            h32 = jnp.maximum(h32, 0.0)
    rel_err = jnp.max(jnp.abs(out - h32)) / (jnp.max(jnp.abs(h32)) + 1e-6)
    assert rel_err < 5e-2, float(rel_err)

    print("KERNEL_OK")
</pallas_src>

<mosaic_0001>
module attributes {stable_mosaic.version = 11 : i64} {
  func.func @_gcn_fused_kernel(%arg0: i32, %arg1: memref<128x128xbf16, #tpu.memory_space<vmem>>, %arg2: memref<128x128xf32, #tpu.memory_space<vmem>>, %arg3: memref<1x128x128xbf16, #tpu.memory_space<vmem>>, %arg4: memref<1x1x128xf32, #tpu.memory_space<vmem>>, %arg5: memref<128x128xf32, #tpu.memory_space<vmem>>) attributes {dimension_semantics = [#tpu.dimension_semantics<arbitrary>], iteration_bounds = array<i64: 3>, scalar_prefetch = 0 : i64, scratch_operands = 0 : i64, tpu.core_type = #tpu.core_type<tc>, window_params = [{pipeline_mode = #tpu.pipeline_mode<synchronous>, transform_indices = @transform_0, window_bounds = array<i64: 128, 128>}, {pipeline_mode = #tpu.pipeline_mode<synchronous>, transform_indices = @transform_1, window_bounds = array<i64: 128, 128>}, {transform_indices = @transform_2, window_bounds = array<i64: 1, 128, 128>}, {transform_indices = @transform_3, window_bounds = array<i64: 1, 1, 128>}, {pipeline_mode = #tpu.pipeline_mode<synchronous>, transform_indices = @transform_4, window_bounds = array<i64: 128, 128>}]} {
    %c0_i32 = arith.constant 0 : i32
    %0 = arith.cmpi eq, %arg0, %c0_i32 : i32
    %1 = arith.extui %0 : i1 to i32
    %c0_i32_0 = arith.constant 0 : i32
    %2 = arith.cmpi ne, %1, %c0_i32_0 : i32
    scf.if %2 {
      %c0_14 = arith.constant 0 : index
      %c0_15 = arith.constant 0 : index
      %21 = vector.load %arg2[%c0_14, %c0_15] : memref<128x128xf32, #tpu.memory_space<vmem>>, vector<128x128xf32>
      %c0_16 = arith.constant 0 : index
      %c0_17 = arith.constant 0 : index
      %22 = vector.load %arg5[%c0_16, %c0_17] : memref<128x128xf32, #tpu.memory_space<vmem>>, vector<128x128xf32>
      tpu.vector_store %arg5[%c0_16, %c0_17], %21 {strides = array<i32>} : memref<128x128xf32, #tpu.memory_space<vmem>>, vector<128x128xf32>,
    } else {
    }
    %c0 = arith.constant 0 : index
    %c0_1 = arith.constant 0 : index
    %3 = vector.load %arg5[%c0, %c0_1] : memref<128x128xf32, #tpu.memory_space<vmem>>, vector<128x128xf32>
    %4 = arith.truncf %3 : vector<128x128xf32> to vector<128x128xbf16>
    %c0_2 = arith.constant 0 : index
    %c0_3 = arith.constant 0 : index
    %c0_4 = arith.constant 0 : index
    %5 = vector.load %arg3[%c0_2, %c0_3, %c0_4] : memref<1x128x128xbf16, #tpu.memory_space<vmem>>, vector<1x128x128xbf16>
    %6 = vector.shape_cast %5 : vector<1x128x128xbf16> to vector<128x128xbf16>
    %cst = arith.constant dense<0.000000e+00> : vector<128x128xf32>
    %7 = tpu.matmul %4, %6, %cst {dimension_numbers = #tpu.dot_dimension_numbers<[1], [0], [0], [1], [0, 0, 1, 1], [], []>} : vector<128x128xbf16>, vector<128x128xbf16>, vector<128x128xf32> -> vector<128x128xf32>
    %c0_5 = arith.constant 0 : index
    %c0_6 = arith.constant 0 : index
    %8 = vector.load %arg1[%c0_5, %c0_6] : memref<128x128xbf16, #tpu.memory_space<vmem>>, vector<128x128xbf16>
    %9 = arith.truncf %7 : vector<128x128xf32> to vector<128x128xbf16>
    %cst_7 = arith.constant dense<0.000000e+00> : vector<128x128xf32>
    %10 = tpu.matmul %8, %9, %cst_7 {dimension_numbers = #tpu.dot_dimension_numbers<[1], [0], [0], [1], [0, 0, 1, 1], [], []>} : vector<128x128xbf16>, vector<128x128xbf16>, vector<128x128xf32> -> vector<128x128xf32>
    %c0_8 = arith.constant 0 : index
    %c0_9 = arith.constant 0 : index
    %c0_10 = arith.constant 0 : index
    %11 = vector.load %arg4[%c0_8, %c0_9, %c0_10] : memref<1x1x128xf32, #tpu.memory_space<vmem>>, vector<1x1x128xf32>
    %12 = vector.shape_cast %11 : vector<1x1x128xf32> to vector<1x128xf32>
    %13 = vector.broadcast %12 : vector<1x128xf32> to vector<128x128xf32>
    %14 = arith.addf %10, %13 : vector<128x128xf32>
    %c2_i32 = arith.constant 2 : i32
    %15 = arith.cmpi ne, %arg0, %c2_i32 : i32
    %16 = arith.extui %15 : i1 to i32
    %c0_i32_11 = arith.constant 0 : i32
    %17 = arith.cmpi ne, %16, %c0_i32_11 : i32
    scf.if %17 {
      %cst_14 = arith.constant 0.000000e+00 : f32
      %21 = vector.broadcast %cst_14 : f32 to vector<128x128xf32>
      %22 = arith.maximumf %14, %21 : vector<128x128xf32>
      %c0_15 = arith.constant 0 : index
      %c0_16 = arith.constant 0 : index
      %23 = vector.load %arg5[%c0_15, %c0_16] : memref<128x128xf32, #tpu.memory_space<vmem>>, vector<128x128xf32>
      tpu.vector_store %arg5[%c0_15, %c0_16], %22 {strides = array<i32>} : memref<128x128xf32, #tpu.memory_space<vmem>>, vector<128x128xf32>,
    } else {
    }
    %c2_i32_12 = arith.constant 2 : i32
    %18 = arith.cmpi eq, %arg0, %c2_i32_12 : i32
    %19 = arith.extui %18 : i1 to i32
    %c0_i32_13 = arith.constant 0 : i32
    %20 = arith.cmpi ne, %19, %c0_i32_13 : i32
    scf.if %20 {
      %c0_14 = arith.constant 0 : index
      %c0_15 = arith.constant 0 : index
      %21 = vector.load %arg5[%c0_14, %c0_15] : memref<128x128xf32, #tpu.memory_space<vmem>>, vector<128x128xf32>
      tpu.vector_store %arg5[%c0_14, %c0_15], %14 {strides = array<i32>} : memref<128x128xf32, #tpu.memory_space<vmem>>, vector<128x128xf32>,
    } else {
    }
    return
  }
  func.func @transform_0(%arg0: i32) -> (i32, i32) {
    %c0_i32 = arith.constant 0 : i32
    %c0_i32_0 = arith.constant 0 : i32
    %c0_i32_1 = arith.constant 0 : i32
    return %c0_i32, %c0_i32_0 : i32, i32
  }
  func.func @transform_1(%arg0: i32) -> (i32, i32) {
    %c0_i32 = arith.constant 0 : i32
    %c0_i32_0 = arith.constant 0 : i32
    %c0_i32_1 = arith.constant 0 : i32
    return %c0_i32, %c0_i32_0 : i32, i32
  }
  func.func @transform_2(%arg0: i32) -> (i32, i32, i32) {
    %c0_i32 = arith.constant 0 : i32
    %c0_i32_0 = arith.constant 0 : i32
    %c0_i32_1 = arith.constant 0 : i32
    return %arg0, %c0_i32, %c0_i32_0 : i32, i32, i32
  }
  func.func @transform_3(%arg0: i32) -> (i32, i32, i32) {
    %c0_i32 = arith.constant 0 : i32
    %c0_i32_0 = arith.constant 0 : i32
    %c0_i32_1 = arith.constant 0 : i32
    return %arg0, %c0_i32, %c0_i32_0 : i32, i32, i32
  }
  func.func @transform_4(%arg0: i32) -> (i32, i32) {
    %c0_i32 = arith.constant 0 : i32
    %c0_i32_0 = arith.constant 0 : i32
    %c0_i32_1 = arith.constant 0 : i32
    return %c0_i32, %c0_i32_0 : i32, i32
  }
}

</mosaic_0001>

<bundles_post_ra>
// kernel: gcn_forward.1
= control target key start
LH: loop header
LB: loop body
LE: loop exit
PB: predicated region body
PF: predicated region fallthrough
CT: control target
= control target key end

     0   :  { %s870_s15 = smov 0   ;;  %s1193_s0 = inlined_call_operand.vmem [shape: bf16[128,128], index: 0, kind: input, shape index: {}]   ;;  %s1194_s1 = inlined_call_operand.vmem [shape: f32[128,128], index: 1, kind: input, shape index: {}]   ;;  %s1195_s2 = inlined_call_operand.vmem [shape: bf16[3,128,128], index: 2, kind: input, shape index: {}]   ;;  %s1196_s3 = inlined_call_operand.vmem [shape: f32[3,1,128], index: 3, kind: input, shape index: {}]   ;;  %s1197_s4 = inlined_call_operand.vmem [shape: f32[128,128], index: 4, kind: output, shape index: {}]  }
   0x1 LB: > { %s876_s16 = sadd.s32 4294967295, %s843_s15   ;;  %p691_p0 = scmp.ge.s32.totalorder %s843_s15, 1  ;;  %s843_s15 = sphi %s870_s15, %s14_s15  }
   0x2   : > { %p165_p1 = scmp.lt.s32.totalorder %s843_s15, 4 }
   0x4   : > { %p166_p2 = pnand %p691_p0, %p165_p1 }
   0x5   : > { %p189_p3 = scmp.lt.s32.totalorder (!%p166_p2), %s876_s16, 2  ;;  %p694_p4 = scmp.ne.s32.totalorder (!%p166_p2), %s876_s16, 0 }
   0x6   : > { %169 = sbr.rel (%p166_p2) target bundleno = 563 (0x233), region = 36 }
   0xb   : > { %s882_s17 = scalar_select %p189_p3, %s876_s16, 2 }
   0xc   : > { %201 = sbr.rel (%p694_p4) target bundleno = 26 (0x1a), region = 40 }
   0xd   : > { %s716_s18 = sshll.u32 %s882_s17, 6  ;;  %s196_s21 = scalar_lea.vmem %s1196_s3, %s882_s17 }
   0xe   : > { %s892_s24 = scalar_lea.vmem %s1195_s2, %s716_s18 }
  0x11   : > { %v202_v0 = vld [vmem:[%s1194_s1] sm:$0xff]  ;;  %v203_v1 = vld [vmem:[%s1194_s1 + $0x8] sm:$0xff]  ;;  %v204_v2 = vld [vmem:[%s1194_s1 + $0x10] sm:$0xff] }
  0x12   : > { %218 = vst [vmem:[%s1197_s4] sm:$0xff] %v202_v0  ;;  %219 = vst [vmem:[%s1197_s4 + $0x8] sm:$0xff] %v203_v1  ;;  %v205_v3 = vld [vmem:[%s1194_s1 + $0x18] sm:$0xff]  ;;  %v206_v4 = vld [vmem:[%s1194_s1 + $0x20] sm:$0xff] }
  0x13   : > { %220 = vst [vmem:[%s1197_s4 + $0x10] sm:$0xff] %v204_v2  ;;  %v207_v5 = vld [vmem:[%s1194_s1 + $0x28] sm:$0xff]  ;;  %221 = vst [vmem:[%s1197_s4 + $0x18] sm:$0xff] %v205_v3  ;;  %v208_v6 = vld [vmem:[%s1194_s1 + $0x30] sm:$0xff] }
  0x14   : > { %222 = vst [vmem:[%s1197_s4 + $0x20] sm:$0xff] %v206_v4  ;;  %223 = vst [vmem:[%s1197_s4 + $0x28] sm:$0xff] %v207_v5  ;;  %v209_v7 = vld [vmem:[%s1194_s1 + $0x38] sm:$0xff]  ;;  %v210_v8 = vld [vmem:[%s1194_s1 + $0x40] sm:$0xff] }
  0x15   : > { %224 = vst [vmem:[%s1197_s4 + $0x30] sm:$0xff] %v208_v6  ;;  %225 = vst [vmem:[%s1197_s4 + $0x38] sm:$0xff] %v209_v7  ;;  %v211_v9 = vld [vmem:[%s1194_s1 + $0x48] sm:$0xff]  ;;  %v212_v10 = vld [vmem:[%s1194_s1 + $0x50] sm:$0xff] }
  0x16   : > { %226 = vst [vmem:[%s1197_s4 + $0x40] sm:$0xff] %v210_v8  ;;  %v213_v11 = vld [vmem:[%s1194_s1 + $0x58] sm:$0xff]  ;;  %227 = vst [vmem:[%s1197_s4 + $0x48] sm:$0xff] %v211_v9  ;;  %v214_v12 = vld [vmem:[%s1194_s1 + $0x60] sm:$0xff] }
  0x17   : > { %228 = vst [vmem:[%s1197_s4 + $0x50] sm:$0xff] %v212_v10  ;;  %229 = vst [vmem:[%s1197_s4 + $0x58] sm:$0xff] %v213_v11  ;;  %v215_v13 = vld [vmem:[%s1194_s1 + $0x68] sm:$0xff]  ;;  %v216_v14 = vld [vmem:[%s1194_s1 + $0x70] sm:$0xff] }
  0x18   : > { %230 = vst [vmem:[%s1197_s4 + $0x60] sm:$0xff] %v214_v12  ;;  %231 = vst [vmem:[%s1197_s4 + $0x68] sm:$0xff] %v215_v13  ;;  %v217_v15 = vld [vmem:[%s1194_s1 + $0x78] sm:$0xff] }
  0x19   : > { %232 = vst [vmem:[%s1197_s4 + $0x70] sm:$0xff] %v216_v14  ;;  %233 = vst [vmem:[%s1197_s4 + $0x78] sm:$0xff] %v217_v15 }
  0x1a PF: > { %v821_v16 = vld [vmem:[%s892_s24 + $0x38] sm:$0xff]   ;;  %v822_v17 = vld [vmem:[%s892_s24 + $0x30] sm:$0xff]   ;;  %v823_v18 = vld [vmem:[%s892_s24 + $0x28] sm:$0xff]   ;;  %p712_p5 = scmp.eq.s32.totalorder %s876_s16, 2 }
  0x1b   : > { %749 = vmatprep.subr.bf16.mxu0 %v821_v16  ;;  %v824_v19 = vld [vmem:[%s892_s24 + $0x20] sm:$0xff]   ;;  %v235_v21 = vld [vmem:[%s1197_s4 + $0x8] sm:$0xff]  ;;  %v825_v23 = vld [vmem:[%s892_s24 + $0x18] sm:$0xff]  }
  0x1c   : > { %750 = vmatpush3.bf16.msra.mxu0 %v821_v16  ;;  %v234_v20 = vld [vmem:[%s1197_s4] sm:$0xff]  ;;  %v826_v24 = vld [vmem:[%s892_s24 + $0x10] sm:$0xff]   ;;  %v827_v25 = vld [vmem:[%s892_s24 + $0x8] sm:$0xff]  }
  0x1d   : > { %751 = vmatprep.subr.bf16.mxu0 %v822_v17  ;;  %v250_v22 = vpack.c.bf16 %v235_v21, %v234_v20  ;;  %v828_v26 = vld [vmem:[%s892_s24] sm:$0xff]   ;;  %v236_v27 = vld [vmem:[%s1197_s4 + $0x10] sm:$0xff]  ;;  %v237_v28 = vld [vmem:[%s1197_s4 + $0x18] sm:$0xff] }
  0x1e   : > { %v238_v29 = vld [vmem:[%s1197_s4 + $0x20] sm:$0xff]  ;;  %v239_v30 = vld [vmem:[%s1197_s4 + $0x28] sm:$0xff]  ;;  %v251_v31 = vpack.c.bf16 %v237_v28, %v236_v27  ;;  %v240_v33 = vld [vmem:[%s1197_s4 + $0x30] sm:$0xff] }
  0x1f   : > { %765 = vmatprep.mubr.bf16.mxu0 %v250_v22  ;;  %v252_v32 = vpack.c.bf16 %v239_v30, %v238_v29  ;;  %v241_v34 = vld [vmem:[%s1197_s4 + $0x38] sm:$0xff]  ;;  %v242_v35 = vld [vmem:[%s1197_s4 + $0x40] sm:$0xff]  ;;  %v243_v36 = vld [vmem:[%s1197_s4 + $0x48] sm:$0xff] }
  0x20   : > { %752 = vmatpush3.bf16.msra.mxu0 %v822_v17  ;;  %v253_v37 = vpack.c.bf16 %v241_v34, %v240_v33  ;;  %v254_v38 = vpack.c.bf16 %v243_v36, %v242_v35  ;;  %v244_v39 = vld [vmem:[%s1197_s4 + $0x50] sm:$0xff]  ;;  %v245_v40 = vld [vmem:[%s1197_s4 + $0x58] sm:$0xff]  ;;  %v246_v41 = vld [vmem:[%s1197_s4 + $0x60] sm:$0xff] }
  0x21   : > { %753 = vmatprep.subr.bf16.mxu0 %v823_v18  ;;  %v247_v42 = vld [vmem:[%s1197_s4 + $0x68] sm:$0xff]  ;;  %v255_v43 = vpack.c.bf16 %v245_v40, %v244_v39  ;;  %v248_v45 = vld [vmem:[%s1197_s4 + $0x70] sm:$0xff]  ;;  %v249_v46 = vld [vmem:[%s1197_s4 + $0x78] sm:$0xff] }
  0x22   : > { %v256_v44 = vpack.c.bf16 %v247_v42, %v246_v41  ;;  %v257_v47 = vpack.c.bf16 %v249_v46, %v248_v45  ;;  %v829_v48 = vld [vmem:[%s1193_s0] sm:$0xff]   ;;  %v830_v9 = vld [vmem:[%s1193_s0 + $0x8] sm:$0xff]   ;;  %v831_v10 = vld [vmem:[%s1193_s0 + $0x10] sm:$0xff]  }
  0x23   : > { %797 = vmatprep.mubr.bf16.mxu1 %v829_v48  ;;  %v832_v11 = vld [vmem:[%s1193_s0 + $0x18] sm:$0xff]   ;;  %v833_v12 = vld [vmem:[%s1193_s0 + $0x20] sm:$0xff]   ;;  %v834_v13 = vld [vmem:[%s1193_s0 + $0x28] sm:$0xff]  }
  0x24   : > { %754 = vmatpush3.bf16.msra.mxu0 %v823_v18  ;;  %v835_v14 = vld [vmem:[%s1193_s0 + $0x30] sm:$0xff]   ;;  %v836_v15 = vld [vmem:[%s1193_s0 + $0x38] sm:$0xff]   ;;  %v703_v16 = vld [vmem:[%s196_s21] ss:$0 sm:$0xff] }
  0x25   : > { %755 = vmatprep.subr.bf16.mxu0 %v824_v19 }
  0x28   : > { %756 = vmatpush3.bf16.msra.mxu0 %v824_v19 }
  0x29   : > { %757 = vmatprep.subr.bf16.mxu0 %v825_v23 }
  0x2c   : > { %758 = vmatpush3.bf16.msra.mxu0 %v825_v23 }
  0x2d   : > { %759 = vmatprep.subr.bf16.mxu0 %v826_v24 }
  0x30   : > { %760 = vmatpush3.bf16.msra.mxu0 %v826_v24 }
  0x31   : > { %761 = vmatprep.subr.bf16.mxu0 %v827_v25 }
  0x34   : > { %762 = vmatpush3.bf16.msra.mxu0 %v827_v25 }
  0x35   : > { %763 = vmatprep.subr.bf16.mxu0 %v828_v26 }
  0x38   : > { %764 = vmatpush3.bf16.msra.mxu0 %v828_v26 }
  0x3b   : > { %766 = vmatmul.mubr.bf16.vlgmr.msra.gmra.mxu0 %v251_v31 }
  0x3c   : > { %769 = vmatprep.mubr.bf16.mxu0 %v252_v32 }
  0x43   : > { %770 = vmatmul.mubr.bf16.gmra.mxu0 %v253_v37 }
  0x44   : > { %773 = vmatprep.mubr.bf16.mxu0 %v254_v38 }
  0x4b   : > { %774 = vmatmul.mubr.bf16.gmra.mxu0 %v255_v43 }
  0x4c   : > { %777 = vmatprep.mubr.bf16.mxu0 %v256_v44 }
  0x53   : > { %778 = vmatmul.mubr.bf16.gmra.mxu0 %v257_v47 }
  0xfb   : > { %v767_v49 = vpop.f32.mrf.mxu0 }
  0xfd   : > { %v356_v50 = vpop.f32.mrf.mxu0 }
  0xff   : > { %v768_v51 = vpop.f32.mrf.mxu0 }
 0x100   : > { %v436_v7 = vpack.c.bf16 %v768_v51, %v767_v49 }
 0x101   : > { %v359_v52 = vpop.f32.mrf.mxu0 }
 0x102   : > { %v435_v8 = vpack.c.bf16 %v359_v52, %v356_v50 }
 0x103   : > { %v771_v53 = vpop.f32.mrf.mxu0 }
 0x105   : > { %v372_v54 = vpop.f32.mrf.mxu0 }
 0x107   : > { %v772_v55 = vpop.f32.mrf.mxu0 }
 0x108   : > { %v438_v5 = vpack.c.bf16 %v772_v55, %v771_v53 }
 0x109   : > { %v375_v56 = vpop.f32.mrf.mxu0 }
 0x10a   : > { %v437_v6 = vpack.c.bf16 %v375_v56, %v372_v54 }
 0x10b   : > { %v775_v57 = vpop.f32.mrf.mxu0 }
 0x10d   : > { %v388_v58 = vpop.f32.mrf.mxu0 }
 0x10f   : > { %v776_v59 = vpop.f32.mrf.mxu0 }
 0x110   : > { %v440_v3 = vpack.c.bf16 %v776_v59, %v775_v57 }
 0x111   : > { %v391_v60 = vpop.f32.mrf.mxu0 }
 0x112   : > { %v439_v4 = vpack.c.bf16 %v391_v60, %v388_v58 }
 0x113   : > { %v779_v61 = vpop.f32.mrf.mxu0 }
 0x115   : > { %v404_v62 = vpop.f32.mrf.mxu0 }
 0x117   : > { %v780_v63 = vpop.f32.mrf.mxu0 }
 0x118   : > { %v442_v0 = vpack.c.bf16 %v780_v63, %v779_v61 }
 0x119   : > { %v407_v1 = vpop.f32.mrf.mxu0 }
 0x11a   : > { %v441_v2 = vpack.c.bf16 %v407_v1, %v404_v62  ;;  %781 = vmatprep.subr.bf16.mxu1 %v442_v0 }
 0x11b   : > { %782 = vmatpush3.bf16.msra.mxu1 %v442_v0 }
 0x11c   : > { %783 = vmatprep.subr.bf16.mxu1 %v441_v2 }
 0x11f   : > { %784 = vmatpush3.bf16.msra.mxu1 %v441_v2 }
 0x120   : > { %785 = vmatprep.subr.bf16.mxu1 %v440_v3 }
 0x123   : > { %786 = vmatpush3.bf16.msra.mxu1 %v440_v3 }
 0x124   : > { %787 = vmatprep.subr.bf16.mxu1 %v439_v4 }
 0x127   : > { %788 = vmatpush3.bf16.msra.mxu1 %v439_v4 }
 0x128   : > { %789 = vmatprep.subr.bf16.mxu1 %v438_v5 }
 0x12b   : > { %790 = vmatpush3.bf16.msra.mxu1 %v438_v5 }
 0x12c   : > { %791 = vmatprep.subr.bf16.mxu1 %v437_v6 }
 0x12f   : > { %792 = vmatpush3.bf16.msra.mxu1 %v437_v6 }
 0x130   : > { %793 = vmatprep.subr.bf16.mxu1 %v436_v7 }
 0x133   : > { %794 = vmatpush3.bf16.msra.mxu1 %v436_v7 }
 0x134   : > { %795 = vmatprep.subr.bf16.mxu1 %v435_v8 }
 0x137   : > { %796 = vmatpush3.bf16.msra.mxu1 %v435_v8 }
 0x13a   : > { %798 = vmatmul.mubr.bf16.vlgmr.msra.gmra.mxu1 %v830_v9 }
 0x13b   : > { %801 = vmatprep.mubr.bf16.mxu1 %v831_v10 }
 0x142   : > { %802 = vmatmul.mubr.bf16.gmra.mxu1 %v832_v11 }
 0x143   : > { %805 = vmatprep.mubr.bf16.mxu1 %v833_v12 }
 0x14a   : > { %806 = vmatmul.mubr.bf16.gmra.mxu1 %v834_v13 }
 0x14b   : > { %809 = vmatprep.mubr.bf16.mxu1 %v835_v14 }
 0x152   : > { %810 = vmatmul.mubr.bf16.gmra.mxu1 %v836_v15 }
 0x1fa   : > { %v799_v17 = vpop.f32.mrf.mxu1 }
 0x1fb   : > { %v1076_v18 = vadd.f32 %v799_v17, %v703_v16 }
 0x1fc   : > { %v532_v19 = vpop.f32.mrf.mxu1 }
 0x1fd   : > { %v1078_v20 = vadd.f32 %v703_v16, %v532_v19 }
 0x1fe   : > { %v800_v21 = vpop.f32.mrf.mxu1 }
 0x1ff   : > { %v1080_v22 = vadd.f32 %v800_v21, %v703_v16 }
 0x200   : > { %v535_v23 = vpop.f32.mrf.mxu1 }
 0x201   : > { %v536_v24 = vadd.f32 %v703_v16, %v535_v23 }
 0x202   : > { %v803_v25 = vpop.f32.mrf.mxu1 }
 0x203   : > { %v1082_v26 = vadd.f32 %v803_v25, %v703_v16 }
 0x204   : > { %v548_v27 = vpop.f32.mrf.mxu1 }
 0x205   : > { %v549_v28 = vadd.f32 %v703_v16, %v548_v27 }
 0x206   : > { %v804_v29 = vpop.f32.mrf.mxu1 }
 0x207   : > { %v560_v30 = vadd.f32 %v804_v29, %v703_v16 }
 0x208   : > { %v551_v31 = vpop.f32.mrf.mxu1 }
 0x209   : > { %v552_v32 = vadd.f32 %v703_v16, %v551_v31 }
 0x20a   : > { %v807_v33 = vpop.f32.mrf.mxu1 }
 0x20b   : > { %v573_v34 = vadd.f32 %v807_v33, %v703_v16 }
 0x20c   : > { %v564_v35 = vpop.f32.mrf.mxu1 }
 0x20d   : > { %v565_v36 = vadd.f32 %v703_v16, %v564_v35 }
 0x20e   : > { %v808_v37 = vpop.f32.mrf.mxu1 }
 0x20f   : > { %v576_v38 = vadd.f32 %v808_v37, %v703_v16 }
 0x210   : > { %v567_v39 = vpop.f32.mrf.mxu1 }
 0x211   : > { %v568_v40 = vadd.f32 %v703_v16, %v567_v39 }
 0x212   : > { %v811_v41 = vpop.f32.mrf.mxu1 }
 0x213   : > { %v589_v42 = vadd.f32 %v811_v41, %v703_v16 }
 0x214   : > { %v580_v43 = vpop.f32.mrf.mxu1 }
 0x215   : > { %v581_v44 = vadd.f32 %v703_v16, %v580_v43  ;;  %598 = sbr.rel (%p712_p5) target bundleno = 548 (0x224), region = 44 }
 0x216   : > { %v812_v45 = vpop.f32.mrf.mxu1 }
 0x217   : > { %v592_v46 = vadd.f32 %v812_v45, %v703_v16 }
 0x218   : > { %v583_v47 = vpop.f32.mrf.mxu1 }
 0x219   : > { %v584_v48 = vadd.f32 %v703_v16, %v583_v47 }
 0x21a   : > { %v599_v49 = vmax.f32 %v1078_v20, 0.0  ;;  %v600_v50 = vmax.f32 %v536_v24, 0.0  ;;  %v601_v51 = vmax.f32 %v1076_v18, 0.0  ;;  %v602_v52 = vmax.f32 %v1080_v22, 0.0 }
 0x21b   : > { %v603_v53 = vmax.f32 %v549_v28, 0.0  ;;  %v604_v54 = vmax.f32 %v552_v32, 0.0  ;;  %v605_v55 = vmax.f32 %v1082_v26, 0.0  ;;  %v606_v56 = vmax.f32 %v560_v30, 0.0 }
 0x21c   : > { %615 = vst [vmem:[%s1197_s4] sm:$0xff] %v599_v49  ;;  %616 = vst [vmem:[%s1197_s4 + $0x8] sm:$0xff] %v600_v50  ;;  %v607_v57 = vmax.f32 %v565_v36, 0.0  ;;  %v608_v58 = vmax.f32 %v568_v40, 0.0  ;;  %v609_v59 = vmax.f32 %v573_v34, 0.0  ;;  %v610_v60 = vmax.f32 %v576_v38, 0.0 }
 0x21d   : > { %617 = vst [vmem:[%s1197_s4 + $0x10] sm:$0xff] %v601_v51  ;;  %618 = vst [vmem:[%s1197_s4 + $0x18] sm:$0xff] %v602_v52  ;;  %v611_v61 = vmax.f32 %v581_v44, 0.0  ;;  %v612_v62 = vmax.f32 %v584_v48, 0.0  ;;  %v613_v63 = vmax.f32 %v589_v42, 0.0  ;;  %v614_v0 = vmax.f32 %v592_v46, 0.0 }
 0x21e   : > { %619 = vst [vmem:[%s1197_s4 + $0x20] sm:$0xff] %v603_v53  ;;  %620 = vst [vmem:[%s1197_s4 + $0x28] sm:$0xff] %v604_v54 }
 0x21f   : > { %621 = vst [vmem:[%s1197_s4 + $0x30] sm:$0xff] %v605_v55  ;;  %622 = vst [vmem:[%s1197_s4 + $0x38] sm:$0xff] %v606_v56 }
 0x220   : > { %623 = vst [vmem:[%s1197_s4 + $0x40] sm:$0xff] %v607_v57  ;;  %624 = vst [vmem:[%s1197_s4 + $0x48] sm:$0xff] %v608_v58 }
 0x221   : > { %625 = vst [vmem:[%s1197_s4 + $0x50] sm:$0xff] %v609_v59  ;;  %626 = vst [vmem:[%s1197_s4 + $0x58] sm:$0xff] %v610_v60 }
 0x222   : > { %627 = vst [vmem:[%s1197_s4 + $0x60] sm:$0xff] %v611_v61  ;;  %628 = vst [vmem:[%s1197_s4 + $0x68] sm:$0xff] %v612_v62 }
 0x223   : > { %629 = vst [vmem:[%s1197_s4 + $0x70] sm:$0xff] %v613_v63  ;;  %630 = vst [vmem:[%s1197_s4 + $0x78] sm:$0xff] %v614_v0 }
 0x224 PF: > { %p713_p6 = scmp.ne.s32.totalorder %s876_s16, 2 }
 0x226   : > { %634 = sbr.rel (%p713_p6) target bundleno = 563 (0x233), region = 48 }
 0x22b   : > { %635 = vst [vmem:[%s1197_s4] sm:$0xff] %v1078_v20  ;;  %636 = vst [vmem:[%s1197_s4 + $0x8] sm:$0xff] %v536_v24 }
 0x22c   : > { %637 = vst [vmem:[%s1197_s4 + $0x10] sm:$0xff] %v1076_v18  ;;  %638 = vst [vmem:[%s1197_s4 + $0x18] sm:$0xff] %v1080_v22 }
 0x22d   : > { %639 = vst [vmem:[%s1197_s4 + $0x20] sm:$0xff] %v549_v28  ;;  %640 = vst [vmem:[%s1197_s4 + $0x28] sm:$0xff] %v552_v32 }
 0x22e   : > { %641 = vst [vmem:[%s1197_s4 + $0x30] sm:$0xff] %v1082_v26  ;;  %642 = vst [vmem:[%s1197_s4 + $0x38] sm:$0xff] %v560_v30 }
 0x22f   : > { %643 = vst [vmem:[%s1197_s4 + $0x40] sm:$0xff] %v565_v36  ;;  %644 = vst [vmem:[%s1197_s4 + $0x48] sm:$0xff] %v568_v40 }
 0x230   : > { %645 = vst [vmem:[%s1197_s4 + $0x50] sm:$0xff] %v573_v34  ;;  %646 = vst [vmem:[%s1197_s4 + $0x58] sm:$0xff] %v576_v38 }
 0x231   : > { %647 = vst [vmem:[%s1197_s4 + $0x60] sm:$0xff] %v581_v44  ;;  %648 = vst [vmem:[%s1197_s4 + $0x68] sm:$0xff] %v584_v48 }
 0x232   : > { %649 = vst [vmem:[%s1197_s4 + $0x70] sm:$0xff] %v589_v42  ;;  %650 = vst [vmem:[%s1197_s4 + $0x78] sm:$0xff] %v592_v46 }
 0x233 PF: > { %s14_s15 = sadd.s32 1, %s843_s15  }
 0x234   : > { %p11_p7 = scmp.ge.s32.totalorder %s14_s15, 5  }
 0x236   :  { %13 = sbr.rel (!%p11_p7) target bundleno = 1 (0x1), region = 77 }

</bundles_post_ra>
